<compile_context>
chip_gen: v7x
topology: tpu7x:2x2x1
jax: 0.10.0
libtpu: 0.0.40
codegen_flags: <defaults>
</compile_context>

<pallas_src>
import functools
import math

import jax
import jax.numpy as jnp
from jax.experimental import pallas as pl
from jax.experimental.pallas import tpu as pltpu

SLOPE = 0.01  # LeakyReLU negative slope (module default)


def _leaky_relu(x):
    return jnp.where(x >= 0, x, SLOPE * x)


def _banded_weights(w_oihw, W):
    """(Cout, Cin, 3, 3) OIHW conv weights -> (3, W*Cin, W*Cout) banded matmul
    weights.  M[dy, p*Cin+ci, w*Cout+co] = w[co, ci, dy, p-w+1] for |p-w| <= 1
    (zero otherwise), which also encodes the zero padding along W."""
    Cout, Cin, KH, KW = w_oihw.shape
    wt = jnp.transpose(w_oihw, (2, 3, 1, 0))            # (dy, dx, ci, co)
    p = jnp.arange(W)[:, None, None]
    w = jnp.arange(W)[None, None, :]
    dx = jnp.arange(KW)[None, :, None]
    sel = (p == (w + dx - 1)).astype(w_oihw.dtype)       # (W, 3, W)
    m = jnp.einsum("pdw,ydio->ypiwo", sel, wt)           # (3, W, Cin, W, Cout)
    return m.reshape(KH, W * Cin, W * Cout)


def _residual_block_kernel(xpad_ref, w1_ref, w2_ref, out_ref, *, H, W, Cout):
    # xpad_ref: (1, H+2, W*Cin)   H-zero-padded, lane-dense activations
    # w1_ref:   (3, W*Cin,  W*Cout)  banded conv1 weights (one slab per ky)
    # w2_ref:   (3, W*Cout, W*Cout)  banded conv2 weights
    # out_ref:  (1, H, W*Cout)
    WC = W * Cout

    # ---- conv1: 3 banded matmuls (ky taps), K = W*Cin ----
    acc1 = jnp.zeros((H, WC), jnp.float32)
    for dy in range(3):
        rows = xpad_ref[0, dy:dy + H, :]                 # (H, W*Cin) row view
        acc1 = acc1 + jnp.dot(rows, w1_ref[dy],
                              preferred_element_type=jnp.float32)
    mid = _leaky_relu(acc1)                              # (H, W*Cout)

    # Border with two zero rows (value op; no scratch, no full re-zeroing).
    zrow = jnp.zeros((1, WC), jnp.float32)
    midp = jnp.concatenate([zrow, mid, zrow], axis=0)    # (H+2, W*Cout)

    # ---- conv2: same structure ----
    acc2 = jnp.zeros((H, WC), jnp.float32)
    for dy in range(3):
        acc2 = acc2 + jnp.dot(midp[dy:dy + H, :], w2_ref[dy],
                              preferred_element_type=jnp.float32)
    out = _leaky_relu(acc2)                              # (H, W*Cout)

    # ---- residual add: identity = interior rows of the padded input ----
    identity = xpad_ref[0, 1:H + 1, :].astype(jnp.float32)
    out_ref[...] = (out + identity)[None].astype(out_ref.dtype)


def residual_block(x_nchw, w1, w2):
    """x_nchw: (N, C, H, W); w1/w2: (Cout, Cin, 3, 3) PyTorch OIHW layout."""
    N, C, H, W = x_nchw.shape
    Cout = w1.shape[0]
    assert w1.shape == (Cout, C, 3, 3) and w2.shape == (Cout, Cout, 3, 3)
    assert C == Cout, "residual add requires in_ch == out_ch"

    # NCHW -> lane-dense (N, H, W*C); pad only along H (W padding is folded
    # into the banded weights).
    x = jnp.transpose(x_nchw, (0, 2, 3, 1)).reshape(N, H, W * C)
    xpad = jnp.pad(x, ((0, 0), (1, 1), (0, 0)))
    w1b = _banded_weights(w1, W)                         # (3, W*C,    W*Cout)
    w2b = _banded_weights(w2, W)                         # (3, W*Cout, W*Cout)

    kernel = functools.partial(_residual_block_kernel, H=H, W=W, Cout=Cout)

    out_flat = pl.pallas_call(
        kernel,
        out_shape=jax.ShapeDtypeStruct((N, H, W * Cout), x.dtype),
        grid_spec=pltpu.PrefetchScalarGridSpec(
            num_scalar_prefetch=0,
            grid=(N,),
            in_specs=[
                pl.BlockSpec((1, H + 2, W * C), lambda n: (n, 0, 0)),
                pl.BlockSpec((3, W * C, W * Cout), lambda n: (0, 0, 0)),
                pl.BlockSpec((3, W * Cout, W * Cout), lambda n: (0, 0, 0)),
            ],
            out_specs=pl.BlockSpec((1, H, W * Cout), lambda n: (n, 0, 0)),
        ),
        compiler_params=pltpu.CompilerParams(
            dimension_semantics=("parallel",),
            vmem_limit_bytes=32 * 1024 * 1024,
        ),
    )(xpad, w1b, w2b)

    # Back to NCHW only at the boundary.
    return jnp.transpose(out_flat.reshape(N, H, W, Cout), (0, 3, 1, 2))


def residual_block_ref(x_nchw, w1, w2):
    """Pure-JAX reference matching the PyTorch forward (NCHW)."""
    dn = jax.lax.conv_dimension_numbers(
        x_nchw.shape, w1.shape, ("NCHW", "OIHW", "NCHW"))
    out = jax.lax.conv_general_dilated(
        x_nchw, w1, (1, 1), ((1, 1), (1, 1)), dimension_numbers=dn)
    out = _leaky_relu(out)
    out = jax.lax.conv_general_dilated(
        out, w2, (1, 1), ((1, 1), (1, 1)), dimension_numbers=dn)
    out = _leaky_relu(out)
    return out + x_nchw


if __name__ == "__main__":
    N, C, H, W = 2, 4, 16, 16  # in_ch == out_ch so the residual add is valid
    key = jax.random.PRNGKey(0)
    kx, k1, k2 = jax.random.split(key, 3)

    x = jax.random.normal(kx, (N, C, H, W), jnp.float32)
    fan_in = C * 3 * 3
    w1 = jax.random.normal(k1, (C, C, 3, 3), jnp.float32) / math.sqrt(fan_in)
    w2 = jax.random.normal(k2, (C, C, 3, 3), jnp.float32) / math.sqrt(fan_in)

    out = residual_block(x, w1, w2)
    out = jax.block_until_ready(out)

    ref = residual_block_ref(x, w1, w2)
    assert out.shape == (N, C, H, W)
    assert jnp.allclose(out, ref, atol=1e-4, rtol=1e-4)
    print("KERNEL_OK")
</pallas_src>

<mosaic_0001>
module attributes {stable_mosaic.version = 11 : i64} {
  func.func @_residual_block_kernel(%arg0: i32, %arg1: memref<1x18x64xf32, #tpu.memory_space<vmem>>, %arg2: memref<3x64x64xf32, #tpu.memory_space<vmem>>, %arg3: memref<3x64x64xf32, #tpu.memory_space<vmem>>, %arg4: memref<1x16x64xf32, #tpu.memory_space<vmem>>) attributes {dimension_semantics = [#tpu.dimension_semantics<parallel>], iteration_bounds = array<i64: 2>, scalar_prefetch = 0 : i64, scratch_operands = 0 : i64, tpu.core_type = #tpu.core_type<tc>, window_params = [{transform_indices = @transform_0, window_bounds = array<i64: 1, 18, 64>}, {pipeline_mode = #tpu.pipeline_mode<synchronous>, transform_indices = @transform_1, window_bounds = array<i64: 3, 64, 64>}, {pipeline_mode = #tpu.pipeline_mode<synchronous>, transform_indices = @transform_2, window_bounds = array<i64: 3, 64, 64>}, {transform_indices = @transform_3, window_bounds = array<i64: 1, 16, 64>}]} {
    %cst = arith.constant 0.000000e+00 : f32
    %0 = vector.broadcast %cst : f32 to vector<16x64xf32>
    %c0 = arith.constant 0 : index
    %c0_0 = arith.constant 0 : index
    %c0_1 = arith.constant 0 : index
    %1 = vector.load %arg1[%c0, %c0_0, %c0_1] : memref<1x18x64xf32, #tpu.memory_space<vmem>>, vector<1x16x64xf32>
    %2 = vector.shape_cast %1 : vector<1x16x64xf32> to vector<16x64xf32>
    %c0_2 = arith.constant 0 : index
    %c0_3 = arith.constant 0 : index
    %c0_4 = arith.constant 0 : index
    %3 = vector.load %arg2[%c0_2, %c0_3, %c0_4] : memref<3x64x64xf32, #tpu.memory_space<vmem>>, vector<1x64x64xf32>
    %4 = vector.shape_cast %3 : vector<1x64x64xf32> to vector<64x64xf32>
    %cst_5 = arith.constant dense<0.000000e+00> : vector<16x64xf32>
    %5 = tpu.matmul %2, %4, %cst_5 {dimension_numbers = #tpu.dot_dimension_numbers<[1], [0], [0], [1], [0, 0, 1, 1], [], []>} : vector<16x64xf32>, vector<64x64xf32>, vector<16x64xf32> -> vector<16x64xf32>
    %6 = arith.addf %0, %5 : vector<16x64xf32>
    %c0_6 = arith.constant 0 : index
    %c1 = arith.constant 1 : index
    %c0_7 = arith.constant 0 : index
    %7 = vector.load %arg1[%c0_6, %c1, %c0_7] : memref<1x18x64xf32, #tpu.memory_space<vmem>>, vector<1x16x64xf32>
    %8 = vector.shape_cast %7 : vector<1x16x64xf32> to vector<16x64xf32>
    %c1_8 = arith.constant 1 : index
    %c0_9 = arith.constant 0 : index
    %c0_10 = arith.constant 0 : index
    %9 = vector.load %arg2[%c1_8, %c0_9, %c0_10] : memref<3x64x64xf32, #tpu.memory_space<vmem>>, vector<1x64x64xf32>
    %10 = vector.shape_cast %9 : vector<1x64x64xf32> to vector<64x64xf32>
    %cst_11 = arith.constant dense<0.000000e+00> : vector<16x64xf32>
    %11 = tpu.matmul %8, %10, %cst_11 {dimension_numbers = #tpu.dot_dimension_numbers<[1], [0], [0], [1], [0, 0, 1, 1], [], []>} : vector<16x64xf32>, vector<64x64xf32>, vector<16x64xf32> -> vector<16x64xf32>
    %12 = arith.addf %6, %11 : vector<16x64xf32>
    %c0_12 = arith.constant 0 : index
    %c2 = arith.constant 2 : index
    %c0_13 = arith.constant 0 : index
    %13 = vector.load %arg1[%c0_12, %c2, %c0_13] : memref<1x18x64xf32, #tpu.memory_space<vmem>>, vector<1x16x64xf32>
    %14 = vector.shape_cast %13 : vector<1x16x64xf32> to vector<16x64xf32>
    %c2_14 = arith.constant 2 : index
    %c0_15 = arith.constant 0 : index
    %c0_16 = arith.constant 0 : index
    %15 = vector.load %arg2[%c2_14, %c0_15, %c0_16] : memref<3x64x64xf32, #tpu.memory_space<vmem>>, vector<1x64x64xf32>
    %16 = vector.shape_cast %15 : vector<1x64x64xf32> to vector<64x64xf32>
    %cst_17 = arith.constant dense<0.000000e+00> : vector<16x64xf32>
    %17 = tpu.matmul %14, %16, %cst_17 {dimension_numbers = #tpu.dot_dimension_numbers<[1], [0], [0], [1], [0, 0, 1, 1], [], []>} : vector<16x64xf32>, vector<64x64xf32>, vector<16x64xf32> -> vector<16x64xf32>
    %18 = arith.addf %12, %17 : vector<16x64xf32>
    %cst_18 = arith.constant 0.000000e+00 : f32
    %19 = vector.broadcast %cst_18 : f32 to vector<16x64xf32>
    %20 = arith.cmpf oge, %18, %19 : vector<16x64xf32>
    %cst_19 = arith.constant 0.00999999977 : f32
    %21 = vector.broadcast %cst_19 : f32 to vector<16x64xf32>
    %22 = arith.mulf %21, %18 : vector<16x64xf32>
    %23 = arith.select %20, %18, %22 : vector<16x64xi1>, vector<16x64xf32>
    %cst_20 = arith.constant 0.000000e+00 : f32
    %24 = vector.broadcast %cst_20 : f32 to vector<1x64xf32>
    %25 = tpu.concatenate %24, %23, %24 in 0 : vector<1x64xf32>, vector<16x64xf32>, vector<1x64xf32> -> vector<18x64xf32>
    %cst_21 = arith.constant 0.000000e+00 : f32
    %26 = vector.broadcast %cst_21 : f32 to vector<16x64xf32>
    %27 = vector.extract_strided_slice %25 {offsets = [0, 0], sizes = [16, 64], strides = [1, 1]} : vector<18x64xf32> to vector<16x64xf32>
    %c0_22 = arith.constant 0 : index
    %c0_23 = arith.constant 0 : index
    %c0_24 = arith.constant 0 : index
    %28 = vector.load %arg3[%c0_22, %c0_23, %c0_24] : memref<3x64x64xf32, #tpu.memory_space<vmem>>, vector<1x64x64xf32>
    %29 = vector.shape_cast %28 : vector<1x64x64xf32> to vector<64x64xf32>
    %cst_25 = arith.constant dense<0.000000e+00> : vector<16x64xf32>
    %30 = tpu.matmul %27, %29, %cst_25 {dimension_numbers = #tpu.dot_dimension_numbers<[1], [0], [0], [1], [0, 0, 1, 1], [], []>} : vector<16x64xf32>, vector<64x64xf32>, vector<16x64xf32> -> vector<16x64xf32>
    %31 = arith.addf %26, %30 : vector<16x64xf32>
    %32 = vector.extract_strided_slice %25 {offsets = [1, 0], sizes = [16, 64], strides = [1, 1]} : vector<18x64xf32> to vector<16x64xf32>
    %c1_26 = arith.constant 1 : index
    %c0_27 = arith.constant 0 : index
    %c0_28 = arith.constant 0 : index
    %33 = vector.load %arg3[%c1_26, %c0_27, %c0_28] : memref<3x64x64xf32, #tpu.memory_space<vmem>>, vector<1x64x64xf32>
    %34 = vector.shape_cast %33 : vector<1x64x64xf32> to vector<64x64xf32>
    %cst_29 = arith.constant dense<0.000000e+00> : vector<16x64xf32>
    %35 = tpu.matmul %32, %34, %cst_29 {dimension_numbers = #tpu.dot_dimension_numbers<[1], [0], [0], [1], [0, 0, 1, 1], [], []>} : vector<16x64xf32>, vector<64x64xf32>, vector<16x64xf32> -> vector<16x64xf32>
    %36 = arith.addf %31, %35 : vector<16x64xf32>
    %37 = vector.extract_strided_slice %25 {offsets = [2, 0], sizes = [16, 64], strides = [1, 1]} : vector<18x64xf32> to vector<16x64xf32>
    %c2_30 = arith.constant 2 : index
    %c0_31 = arith.constant 0 : index
    %c0_32 = arith.constant 0 : index
    %38 = vector.load %arg3[%c2_30, %c0_31, %c0_32] : memref<3x64x64xf32, #tpu.memory_space<vmem>>, vector<1x64x64xf32>
    %39 = vector.shape_cast %38 : vector<1x64x64xf32> to vector<64x64xf32>
    %cst_33 = arith.constant dense<0.000000e+00> : vector<16x64xf32>
    %40 = tpu.matmul %37, %39, %cst_33 {dimension_numbers = #tpu.dot_dimension_numbers<[1], [0], [0], [1], [0, 0, 1, 1], [], []>} : vector<16x64xf32>, vector<64x64xf32>, vector<16x64xf32> -> vector<16x64xf32>
    %41 = arith.addf %36, %40 : vector<16x64xf32>
    %cst_34 = arith.constant 0.000000e+00 : f32
    %42 = vector.broadcast %cst_34 : f32 to vector<16x64xf32>
    %43 = arith.cmpf oge, %41, %42 : vector<16x64xf32>
    %cst_35 = arith.constant 0.00999999977 : f32
    %44 = vector.broadcast %cst_35 : f32 to vector<16x64xf32>
    %45 = arith.mulf %44, %41 : vector<16x64xf32>
    %46 = arith.select %43, %41, %45 : vector<16x64xi1>, vector<16x64xf32>
    %c0_36 = arith.constant 0 : index
    %c1_37 = arith.constant 1 : index
    %c0_38 = arith.constant 0 : index
    %47 = vector.load %arg1[%c0_36, %c1_37, %c0_38] : memref<1x18x64xf32, #tpu.memory_space<vmem>>, vector<1x16x64xf32>
    %48 = vector.shape_cast %47 : vector<1x16x64xf32> to vector<16x64xf32>
    %49 = arith.addf %46, %48 : vector<16x64xf32>
    %50 = vector.shape_cast %49 : vector<16x64xf32> to vector<1x16x64xf32>
    %c0_39 = arith.constant 0 : index
    %c0_40 = arith.constant 0 : index
    %c0_41 = arith.constant 0 : index
    %51 = vector.load %arg4[%c0_39, %c0_40, %c0_41] : memref<1x16x64xf32, #tpu.memory_space<vmem>>, vector<1x16x64xf32>
    tpu.vector_store %arg4[%c0_39, %c0_40, %c0_41], %50 {strides = array<i32>} : memref<1x16x64xf32, #tpu.memory_space<vmem>>, vector<1x16x64xf32>,
    return
  }
  func.func @transform_0(%arg0: i32) -> (i32, i32, i32) {
    %c0_i32 = arith.constant 0 : i32
    %c0_i32_0 = arith.constant 0 : i32
    %c0_i32_1 = arith.constant 0 : i32
    return %arg0, %c0_i32, %c0_i32_0 : i32, i32, i32
  }
  func.func @transform_1(%arg0: i32) -> (i32, i32, i32) {
    %c0_i32 = arith.constant 0 : i32
    %c0_i32_0 = arith.constant 0 : i32
    %c0_i32_1 = arith.constant 0 : i32
    %c0_i32_2 = arith.constant 0 : i32
    return %c0_i32, %c0_i32_0, %c0_i32_1 : i32, i32, i32
  }
  func.func @transform_2(%arg0: i32) -> (i32, i32, i32) {
    %c0_i32 = arith.constant 0 : i32
    %c0_i32_0 = arith.constant 0 : i32
    %c0_i32_1 = arith.constant 0 : i32
    %c0_i32_2 = arith.constant 0 : i32
    return %c0_i32, %c0_i32_0, %c0_i32_1 : i32, i32, i32
  }
  func.func @transform_3(%arg0: i32) -> (i32, i32, i32) {
    %c0_i32 = arith.constant 0 : i32
    %c0_i32_0 = arith.constant 0 : i32
    %c0_i32_1 = arith.constant 0 : i32
    return %arg0, %c0_i32, %c0_i32_0 : i32, i32, i32
  }
}

</mosaic_0001>

<bundles_post_ra>
// kernel: tpu_custom_call.1
= control target key start
LH: loop header
LB: loop body
LE: loop exit
PB: predicated region body
PF: predicated region fallthrough
CT: control target
= control target key end

     0   :  { %8 = vsyncpa [#allocation3], 0  ;;  %s1611_s0 = inlined_call_operand.vmem [shape: f32[2,18,64], index: 0, kind: input, shape index: {}]   ;;  %s1612_s1 = inlined_call_operand.hbm [shape: f32[3,64,64], index: 1, kind: input, shape index: {}]   ;;  %s1613_s2 = inlined_call_operand.hbm [shape: f32[3,64,64], index: 2, kind: input, shape index: {}]   ;;  %s1614_s3 = inlined_call_operand.hbm [shape: f32[2,16,64], index: 3, kind: output, shape index: {}]  }
   0x1   :  { %9 = vsyncpa [#allocation6], 0 }
   0x2   :  { %10 = vsyncpa [#allocation4], 0 }
   0x3   :  { %12 = vsyncpa [#allocation4 + $0x1], 0  ;;  %s1406_s12 = smov 0   ;;  %s1408_s13 = smov 0  }
   0x4   :  { %s1410_s14 = smov 0   ;;  %s1412_s15 = smov 0  }
   0x5 LB: > { %s1427_s16 = sadd.s32 4294967295, %s1377_s15   ;;  %s880_s17 = sadd.s32 4294967294, %s1377_s15   ;;  %s1377_s15 = sphi %s1412_s15, %s1632_s15   ;;  %s1373_s14 = sphi %s1410_s14, %s1631_s14   ;;  %s1369_s13 = sphi %s1408_s13, %s1630_s13   ;;  %s1365_s12 = sphi %s1406_s12, %s1629_s12  }
   0x6   : > { %s1431_s18 = sadd.s32 1, %s1377_s15   ;;  %s93_s19 = sadd.s32 1, %s1373_s14 }
   0x7   : > { %s90_s20 = ssub.s32 %s1377_s15, %s1431_s18  ;;  %p103_p0 = scmp.ne.s32.totalorder %s1373_s14, %s1369_s13 }
   0x8   : > { %p91_p1 = scmp.eq.s32.totalorder %s90_s20, 0  ;;  %p104_p2 = scmp.eq.s32.totalorder %s1427_s16, 1 }
   0x9   : > { %p109_p3 = scmp.ne.s32.totalorder %s1369_s13, %s1365_s12  ;;  %p110_p4 = scmp.eq.s32.totalorder %s880_s17, 1 }
   0xa   : > { %s1442_s21 = scalar_select %p91_p1, %s1373_s14, %s93_s19  }
   0xb   : > { %p1444_p5 = por %p104_p2, %p103_p0  ;;  %p1448_p6 = por %p110_p4, %p109_p3 }
   0xc   : > { %p881_p7 = scmp.ge.s32.totalorder %s1377_s15, 1  ;;  %p117_p8 = scmp.lt.s32.totalorder %s1377_s15, 3 }
   0xd   : > { %s1618_s22 = scalar_select %p1444_p5, 1, 0 }
   0xe   : > { %s1619_s23 = scalar_select %p1448_p6, 1, 0 }
   0xf   : > { %p1615_p9 = scmp.eq.s32.totalorder %s1427_s16, 0  ;;  %p1455_p10 = pnand %p881_p7, %p117_p8 }
  0x10   : > { %s1379_s25 = smov [#allocation2]   ;;  %s1380_s28 = smov [#allocation5]  }
  0x11   : > { %s1620_s24 = scalar_select %p1455_p10, 1, 0 }
  0x12   : > { %s129_s26 = sshll.u32 %s1379_s25, 4  ;;  %p1197_p11 = pneg %p1455_p10  ;;  %s130_s26 = int_to_ptr.vmem [resolvable:$true] %s129_s26 }
  0x13   : > { %s142_s29 = sshll.u32 %s1380_s28, 4  ;;  %s1251_s5 = scalar_lea.hbm %s1612_s1, 3072  ;;  %s1467_s29 = int_to_ptr.vmem [resolvable:$true] %s142_s29 }
  0x14   : > { %p1463_p12 = pnand %p1615_p9, %p1197_p11  ;;  %p1252_p13 = scmp.ne.s32.totalorder %s1612_s1, %s1251_s5 }
  0x15   : > { %p1258_p3 = scmp.lt.u32.totalorder %s1251_s5, %s1612_s1 }
  0x16   : > { %p1253_p0 = pneg %p1463_p12 }
  0x18   : > { %p1254_p1 = pnand %p1253_p0, %p1252_p13 }
  0x1a   : > { %p1255_p2 = pneg %p1254_p1 }
  0x1c   : > { %p1260_p4 = pnand %p1258_p3, %p1255_p2 }
  0x1e   : > { %1263 = shalt.err (!%p1260_p4)
}
  0x1f   : > { %s1264_s10 = scalar_lea.vmem %s130_s26, 3072  ;;  %p1272_p9 = scmp.lt.s32.totalorder %s130_s26, %s130_s26 }
  0x20   : > { %p1265_p7 = scmp.ne.s32.totalorder %s130_s26, %s1264_s10  ;;  %p1273_p6 = scmp.lt.s32.totalorder %s1264_s10, %s1264_s10 }
  0x22   : > { %p1267_p8 = pnand %p1265_p7, %p1253_p0  ;;  %p1274_p5 = por %p1273_p6, %p1272_p9 }
  0x24   : > { %p1268_p11 = pneg %p1267_p8 }
  0x26   : > { %p1275_p10 = pnand %p1274_p5, %p1268_p11 }
  0x28   : > { %1278 = shalt.err (!%p1275_p10)
}
  0x29   : > { %s1381_s11 = smov 128   ;;  %s1382_s17 = smov 8  }
  0x2a   : > { %1200 = dma.hbm_to_vmem [thread:$0]  (!%p1463_p12), %s1612_s1, 3072, %s130_s26, [#allocation3], %s1381_s11, %s1381_s11, %s1382_s17  }
  0x2b   : > { %s1279_s30 = scalar_lea.hbm %s1613_s2, 3072 }
  0x2c   : > { %p1280_p13 = scmp.ne.s32.totalorder %s1613_s2, %s1279_s30  ;;  %p1286_p9 = scmp.lt.u32.totalorder %s1279_s30, %s1613_s2 }
  0x2e   : > { %p1282_p5 = pnand %p1280_p13, %p1253_p0 }
  0x30   : > { %p1283_p6 = pneg %p1282_p5 }
  0x32   : > { %p1288_p10 = pnand %p1286_p9, %p1283_p6 }
  0x34   : > { %1291 = shalt.err (!%p1288_p10)
}
  0x35   : > { %s1292_s26 = scalar_lea.vmem %s1467_s29, 3072  ;;  %p1300_p4 = scmp.lt.s32.totalorder %s1467_s29, %s1467_s29 }
  0x36   : > { %p1293_p1 = scmp.ne.s32.totalorder %s1467_s29, %s1292_s26  ;;  %p1301_p7 = scmp.lt.s32.totalorder %s1292_s26, %s1292_s26 }
  0x38   : > { %p1295_p2 = pnand %p1293_p1, %p1253_p0  ;;  %p1302_p8 = por %p1301_p7, %p1300_p4 }
  0x3a   : > { %p1296_p3 = pneg %p1295_p2 }
  0x3c   : > { %p1303_p11 = pnand %p1302_p8, %p1296_p3 }
  0x3e   : > { %1306 = shalt.err (!%p1303_p11)
}
  0x3f   : > { %1203 = dma.hbm_to_vmem [thread:$0]  (!%p1463_p12), %s1613_s2, 3072, %s1467_s29, [#allocation6], %s1381_s11, %s1381_s11, %s1382_s17  }
  0x40   : > { %p1622_p13 = scmp.ne.s32.totalorder %s1620_s24, 0 }
  0x41   : > { %p1623_p5 = scmp.eq.s32.totalorder (!%p1622_p13), %s1427_s16, 0 }
  0x42   : > { %166 = sbr.rel (%p1622_p13) target bundleno = 617 (0x269), region = 32 }
  0x49   : > { %1352 = dma.done.wait (%p1623_p5), [#allocation3], 3072   ;;  %p1624_p0 = pmov %p1623_p5 }
  0x4b   : > { %1354 = vsyncadd (%p1624_p0), [#allocation3], 4294964224  ;;  %p1625_p6 = pmov %p1624_p0 }
  0x4c   : > { %p1626_p9 = pmov %p1624_p0 }
  0x4d   : > { %1356 = dma.done.wait (%p1625_p6), [#allocation6], 3072  }
  0x4e   : > { %1358 = vsyncadd (%p1626_p9), [#allocation6], 4294964224  ;;  %p194_p10 = scmp.lt.s32.totalorder %s1427_s16, 1  ;;  %v212_v0 = vld [vmem:[#allocation2 + $0x40] sm:$0xff]  ;;  %v213_v1 = vld [vmem:[#allocation2 + $0x48] sm:$0xff]  ;;  %vm220_vm0 = vcmask 523264  }
  0x4f   : > { %v214_v2 = vld [vmem:[#allocation2 + $0x50] sm:$0xff]  ;;  %v1082_v3 = vpack.c.bf16 %v213_v1, %v212_v0  ;;  %v215_v4 = vld [vmem:[#allocation2 + $0x58] sm:$0xff]  ;;  %v216_v6 = vld [vmem:[#allocation2 + $0x60] sm:$0xff]  ;;  %vm485_vm3 = vcmask 1040384   ;;  %vm512_vm4 = vcmask 1046528   ;;  %vm685_vm5 = vcmask 1045504  }
  0x50   : > { %s195_s27 = scalar_select %p194_p10, %s1427_s16, 1  ;;  %v1086_v5 = vpack.c.bf16 %v215_v4, %v214_v2  ;;  %v217_v7 = vld [vmem:[#allocation2 + $0x68] sm:$0xff]  ;;  %v218_v10 = vld [vmem:[#allocation2 + $0x70] sm:$0xff]  ;;  %v219_v11 = vld [vmem:[#allocation2 + $0x78] sm:$0xff] }
  0x51   : > { %1083 = vmatprep.subr.bf16.mxu0 %v1082_v3  ;;  %v1090_v9 = vpack.c.bf16 %v217_v7, %v216_v6  ;;  %v1094_v12 = vpack.c.bf16 %v219_v11, %v218_v10  ;;  %v201_v13 = vld [vmem:[#allocation2] sm:$0xff]  ;;  %v202_v14 = vld [vmem:[#allocation2 + $0x8] sm:$0xff]  ;;  %v504_v17 = vld [vmem:[#allocation5 + $0x50] sm:$0xff]  ;;  %s191_s17 = sand.u32 1, %s1369_s13   ;;  %s907_s20 = sshll.u32 %s1427_s16, 8 }
  0x52   : > { %s1186_s29 = smul.u32 24, %s195_s27  ;;  %1085 = vmatpush3.bf16.msra.mxu0 %v1082_v3  ;;  %v502_v15 = vld [vmem:[#allocation5 + $0x40] sm:$0xff]  ;;  %v503_v16 = vld [vmem:[#allocation5 + $0x48] sm:$0xff]  ;;  %v505_v19 = vld [vmem:[#allocation5 + $0x58] sm:$0xff]  ;;  %v1098_v21 = vpack.c.bf16 %v202_v14, %v201_v13  ;;  %s888_s19 = sshll.u32 %s191_s17, 4 }
  0x53   : > { %1087 = vmatprep.subr.bf16.mxu0 %v1086_v5  ;;  %v1130_v18 = vpack.c.bf16 %v503_v16, %v502_v15  ;;  %v1134_v20 = vpack.c.bf16 %v505_v19, %v504_v17  ;;  %v203_v22 = vld [vmem:[#allocation2 + $0x10] sm:$0xff]  ;;  %v204_v23 = vld [vmem:[#allocation2 + $0x18] sm:$0xff]  ;;  %v205_v27 = vld [vmem:[#allocation2 + $0x20] sm:$0xff]  ;;  %s193_s25 = scalar_lea.vmem [#allocation7], %s888_s19  ;;  %s1563_s5 = scalar_lea.hbm %s1614_s3, %s907_s20 }
  0x54   : > { %s1531_s11 = scalar_lea.vmem %s1611_s0, %s1186_s29  ;;  %v1102_v25 = vpack.c.bf16 %v204_v23, %v203_v22  ;;  %v206_v28 = vld [vmem:[#allocation2 + $0x28] sm:$0xff]  ;;  %v207_v30 = vld [vmem:[#allocation2 + $0x30] sm:$0xff]  ;;  %v208_v31 = vld [vmem:[#allocation2 + $0x38] sm:$0xff]  ;;  %s796_s28 = sshll.u32 %s193_s25, 4  ;;  %s1565_s28 = int_to_ptr.vmem [resolvable:$true] %s796_s28 }
  0x55   : > { %v1534_v8 = vld [vmem:[%s1531_s11 + $0x1] sm:$0xff]  ;;  %1131 = vmatprep.subr.bf16.mxu1 %v1130_v18  ;;  %v1539_v24 = vld [vmem:[%s1531_s11 + $0x9] sm:$0xff]  ;;  %v1106_v29 = vpack.c.bf16 %v206_v28, %v205_v27  ;;  %v1110_v32 = vpack.c.bf16 %v208_v31, %v207_v30  ;;  %v387_v34 = vld [vmem:[#allocation2 + $0x88] sm:$0xff]  ;;  %s1570_s16 = scalar_lea.sflag [#allocation4], %s191_s17  ;;  %s1307_s6 = scalar_lea.vmem %s1565_s28, 256 }
  0x56   : > { %984 = vmatprep.mubr.msk.f32.mxu0 %vm220_vm0, %v1534_v8  ;;  %1089 = vmatpush3.bf16.msra.mxu0 %v1086_v5  ;;  %v199_v26 = vld [vmem:[%s1531_s11] sm:$0xff]  ;;  %v386_v33 = vld [vmem:[#allocation2 + $0x80] sm:$0xff]  ;;  %v389_v37 = vld [vmem:[#allocation2 + $0x98] sm:$0xff]  ;;  %p1308_p12 = scmp.ne.s32.totalorder %s1565_s28, %s1307_s6  ;;  %p1627_p1 = scmp.ne.s32.totalorder %s1618_s22, 0 }
  0x57   : > { %1091 = vmatprep.subr.bf16.mxu0 %v1090_v9  ;;  %1133 = vmatpush3.bf16.msra.mxu1 %v1130_v18  ;;  %v1114_v35 = vpack.c.bf16 %v387_v34, %v386_v33  ;;  %v388_v36 = vld [vmem:[#allocation2 + $0x90] sm:$0xff]  ;;  %v200_v38 = vld [vmem:[%s1531_s11 + $0x8] sm:$0xff]  ;;  %v390_v41 = vld [vmem:[#allocation2 + $0xa0] sm:$0xff]  ;;  %s1383_s7 = smov [#allocation7]  }
  0x58   : > { %1135 = vmatprep.subr.bf16.mxu1 %v1134_v20  ;;  %v1118_v39 = vpack.c.bf16 %v389_v37, %v388_v36  ;;  %v383_v40 = vld [vmem:[%s1531_s11 + $0x2] sm:$0xff]  ;;  %v391_v42 = vld [vmem:[#allocation2 + $0xa8] sm:$0xff]  ;;  %v384_v47 = vld [vmem:[%s1531_s11 + $0xa] sm:$0xff]  ;;  %p1309_p2 = pnand %p1308_p12, %p1627_p1  ;;  %s1311_s26 = sshll.u32 %s1383_s7, 4  ;;  %s1312_s26 = int_to_ptr.vmem [resolvable:$false] %s1311_s26 }
  0x59   : > { %v1122_v43 = vpack.c.bf16 %v391_v42, %v390_v41  ;;  %v392_v44 = vld [vmem:[#allocation2 + $0xb0] sm:$0xff]  ;;  %v393_v45 = vld [vmem:[#allocation2 + $0xb8] sm:$0xff]  ;;  %v506_v48 = vld [vmem:[#allocation5 + $0x60] sm:$0xff]  ;;  %s1313_s8 = scalar_lea.vmem %s1312_s26, 512  ;;  %p1314_p4 = scmp.lt.s32.totalorder %s1565_s28, %s1312_s26 }
  0x5a   : > { %1093 = vmatpush3.bf16.msra.mxu0 %v1090_v9  ;;  %v1126_v46 = vpack.c.bf16 %v393_v45, %v392_v44  ;;  %v507_v49 = vld [vmem:[#allocation5 + $0x68] sm:$0xff]  ;;  %v508_v51 = vld [vmem:[#allocation5 + $0x70] sm:$0xff]  ;;  %v509_v52 = vld [vmem:[#allocation5 + $0x78] sm:$0xff]  ;;  %p1310_p3 = pneg %p1309_p2  ;;  %p1315_p7 = scmp.lt.s32.totalorder %s1313_s8, %s1307_s6 }
  0x5b   : > { %1095 = vmatprep.subr.bf16.mxu0 %v1094_v12  ;;  %1137 = vmatpush3.bf16.msra.mxu1 %v1134_v20  ;;  %v1138_v50 = vpack.c.bf16 %v507_v49, %v506_v48  ;;  %v1142_v53 = vpack.c.bf16 %v509_v52, %v508_v51  ;;  %v493_v54 = vld [vmem:[#allocation5] sm:$0xff]  ;;  %v494_v55 = vld [vmem:[#allocation5 + $0x8] sm:$0xff]  ;;  %v495_v2 = vld [vmem:[#allocation5 + $0x10] sm:$0xff] }
  0x5c   : > { %v1146_v56 = vpack.c.bf16 %v494_v55, %v493_v54  ;;  %v496_v3 = vld [vmem:[#allocation5 + $0x18] sm:$0xff]  ;;  %v497_v18 = vld [vmem:[#allocation5 + $0x20] sm:$0xff]  ;;  %v498_v19 = vld [vmem:[#allocation5 + $0x28] sm:$0xff]  ;;  %p1316_p8 = por %p1315_p7, %p1314_p4 }
  0x5d   : > { %1139 = vmatprep.subr.bf16.mxu1 %v1138_v50  ;;  %v1150_v13 = vpack.c.bf16 %v496_v3, %v495_v2  ;;  %v1154_v20 = vpack.c.bf16 %v498_v19, %v497_v18  ;;  %v500_v22 = vld [vmem:[#allocation5 + $0x38] sm:$0xff]  ;;  %v679_v28 = vld [vmem:[#allocation5 + $0x90] sm:$0xff]  ;;  %v681_v31 = vld [vmem:[#allocation5 + $0xa0] sm:$0xff] }
  0x5e   : > { %1097 = vmatpush3.bf16.msra.mxu0 %v1094_v12  ;;  %v683_v34 = vld [vmem:[#allocation5 + $0xb0] sm:$0xff]  ;;  %p1317_p11 = pnand %p1316_p8, %p1310_p3 }
  0x5f   : > { %1099 = vmatprep.subr.bf16.mxu0 %v1098_v21  ;;  %1141 = vmatpush3.bf16.msra.mxu1 %v1138_v50 }
  0x60   : > { %1143 = vmatprep.subr.bf16.mxu1 %v1142_v53 }
  0x61   : > { %985 = vmatmul.mubr.msk.f32.vlgmr.msra.gmra.mrb[0].mxu0 %vm220_vm0, %v1539_v24 }
  0x62   : > { %1101 = vmatpush3.bf16.msra.mxu0 %v1098_v21  ;;  %1003 = vmatprep.mubr.msk.f32.mxu0 %vm220_vm0, %v199_v26  ;;  %v499_v21 = vld [vmem:[#allocation5 + $0x30] sm:$0xff]  ;;  %v678_v26 = vld [vmem:[#allocation5 + $0x88] sm:$0xff] }
  0x63   : > { %1103 = vmatprep.subr.bf16.mxu0 %v1102_v25  ;;  %1145 = vmatpush3.bf16.msra.mxu1 %v1142_v53  ;;  %v1158_v23 = vpack.c.bf16 %v500_v22, %v499_v21 }
  0x64   : > { %1147 = vmatprep.subr.bf16.mxu1 %v1146_v56 }
  0x66   : > { %1105 = vmatpush3.bf16.msra.mxu0 %v1102_v25  ;;  %v677_v25 = vld [vmem:[#allocation5 + $0x80] sm:$0xff] }
  0x67   : > { %1107 = vmatprep.subr.bf16.mxu0 %v1106_v29  ;;  %v1162_v27 = vpack.c.bf16 %v678_v26, %v677_v25 }
  0x6a   : > { %1109 = vmatpush3.bf16.msra.mxu0 %v1106_v29  ;;  %v680_v29 = vld [vmem:[#allocation5 + $0x98] sm:$0xff] }
  0x6b   : > { %1111 = vmatprep.subr.bf16.mxu0 %v1110_v32  ;;  %v1166_v30 = vpack.c.bf16 %v680_v29, %v679_v28 }
  0x6e   : > { %1113 = vmatpush3.bf16.msra.mxu0 %v1110_v32  ;;  %v682_v32 = vld [vmem:[#allocation5 + $0xa8] sm:$0xff] }
  0x6f   : > { %1115 = vmatprep.subr.bf16.mxu0 %v1114_v35  ;;  %v1170_v33 = vpack.c.bf16 %v682_v32, %v681_v31 }
  0x71   : > { %1004 = vmatmul.mubr.msk.f32.vlgmr.msra.gmra.mrb[0].mxu0 %vm220_vm0, %v200_v38 }
  0x72   : > { %1117 = vmatpush3.bf16.msra.mxu0 %v1114_v35  ;;  %1022 = vmatprep.mubr.msk.f32.mxu0 %vm220_vm0, %v383_v40  ;;  %v684_v35 = vld [vmem:[#allocation5 + $0xb8] sm:$0xff] }
  0x73   : > { %1119 = vmatprep.subr.bf16.mxu0 %v1118_v39  ;;  %v1174_v36 = vpack.c.bf16 %v684_v35, %v683_v34 }
  0x76   : > { %1121 = vmatpush3.bf16.msra.mxu0 %v1118_v39 }
  0x77   : > { %1123 = vmatprep.subr.bf16.mxu0 %v1122_v43 }
  0x7a   : > { %1125 = vmatpush3.bf16.msra.mxu0 %v1122_v43 }
  0x7b   : > { %1127 = vmatprep.subr.bf16.mxu0 %v1126_v46 }
  0x7e   : > { %1129 = vmatpush3.bf16.msra.mxu0 %v1126_v46 }
  0x81   : > { %1023 = vmatmul.mubr.msk.f32.vlgmr.msra.gmra.mrb[0].mxu0 %vm220_vm0, %v384_v47 }
 0x154   : > { %v1024_v57 = vpop.f32.mrb[0].mxu0 }
 0x155   : > { %vm478_vm1 = vcmp.ge.f32.partialorder %v1024_v57, 0.0  ;;  %v480_v58 = vmul.f32 0.01, %v1024_v57  ;;  %v466_v59 = vpop.f32.mrb[1].mxu0 }
 0x156   : > { %vm477_vm2 = vcmp.ge.f32.partialorder %v466_v59, 0.0  ;;  %v479_v60 = vmul.f32 0.01, %v466_v59 }
 0x157   : > { %v482_v61 = vsel %vm478_vm1, %v1024_v57, %v480_v58 }
 0x158   : > { %v487_v62 = vrot.slane %v482_v61, 7  ;;  %v481_v63 = vsel %vm477_vm2, %v466_v59, %v479_v60 }
 0x159   : > { %v486_v0 = vrot.slane %v481_v63, 7 }
 0x15a   : > { %v492_v1 = vsel %vm485_vm3, %v487_v62, 0.0 }
 0x15b   : > { %v516_v4 = vrot.slane %v492_v1, 1  ;;  %v689_v5 = vrot.slane %v492_v1, 2  ;;  %v488_v6 = vsel %vm485_vm3, %v486_v0, %v487_v62  ;;  %v491_v7 = vsel %vm485_vm3, 0.0, %v486_v0 }
 0x15c   : > { %v686_v9 = vrot.slane %v491_v7, 2  ;;  %v513_v10 = vrot.slane %v491_v7, 1  ;;  %v514_v11 = vrot.slane %v488_v6, 1  ;;  %v687_v12 = vrot.slane %v488_v6, 2 }
 0x15e   : > { %v515_v14 = vsel %vm512_vm4, %v513_v10, %v514_v11  ;;  %v517_v15 = vsel %vm512_vm4, %v514_v11, %v516_v4  ;;  %v688_v16 = vsel %vm685_vm5, %v686_v9, %v687_v12  ;;  %v690_v17 = vsel %vm685_vm5, %v687_v12, %v689_v5 }
 0x15f   : > { %1041 = vmatprep.mubr.msk.f32.mxu1 %vm220_vm0, %v515_v14 }
 0x160   : > { %1042 = vmatmul.mubr.msk.f32.vlgmr.msra.gmra.mrb[0].mxu1 %vm220_vm0, %v517_v15 }
 0x161   : > { %1149 = vmatpush3.bf16.msra.mxu1 %v1146_v56  ;;  %1060 = vmatprep.mubr.msk.f32.mxu1 %vm220_vm0, %v491_v7 }
 0x162   : > { %1151 = vmatprep.subr.bf16.mxu1 %v1150_v13 }
 0x165   : > { %1153 = vmatpush3.bf16.msra.mxu1 %v1150_v13 }
 0x166   : > { %1155 = vmatprep.subr.bf16.mxu1 %v1154_v20 }
 0x169   : > { %1157 = vmatpush3.bf16.msra.mxu1 %v1154_v20 }
 0x16a   : > { %1159 = vmatprep.subr.bf16.mxu1 %v1158_v23 }
 0x16d   : > { %1161 = vmatpush3.bf16.msra.mxu1 %v1158_v23 }
 0x16e   : > { %1163 = vmatprep.subr.bf16.mxu1 %v1162_v27 }
 0x170   : > { %1061 = vmatmul.mubr.msk.f32.vlgmr.msra.gmra.mrb[0].mxu1 %vm220_vm0, %v488_v6 }
 0x171   : > { %1165 = vmatpush3.bf16.msra.mxu1 %v1162_v27  ;;  %1079 = vmatprep.mubr.msk.f32.mxu1 %vm220_vm0, %v688_v16 }
 0x172   : > { %1167 = vmatprep.subr.bf16.mxu1 %v1166_v30 }
 0x175   : > { %1169 = vmatpush3.bf16.msra.mxu1 %v1166_v30 }
 0x176   : > { %1171 = vmatprep.subr.bf16.mxu1 %v1170_v33 }
 0x179   : > { %1173 = vmatpush3.bf16.msra.mxu1 %v1170_v33 }
 0x17a   : > { %1175 = vmatprep.subr.bf16.mxu1 %v1174_v36 }
 0x17d   : > { %1177 = vmatpush3.bf16.msra.mxu1 %v1174_v36 }
 0x180   : > { %1080 = vmatmul.mubr.msk.f32.vlgmr.msra.gmra.mrb[0].mxu1 %vm220_vm0, %v690_v17 }
 0x253   : > { %v1081_v37 = vpop.f32.mrb[0].mxu1 }
 0x254   : > { %vm773_vm6 = vcmp.ge.f32.partialorder %v1081_v37, 0.0  ;;  %v775_v38 = vmul.f32 0.01, %v1081_v37  ;;  %v761_v39 = vpop.f32.mrb[1].mxu1 }
 0x255   : > { %vm772_vm7 = vcmp.ge.f32.partialorder %v761_v39, 0.0  ;;  %v774_v40 = vmul.f32 0.01, %v761_v39 }
 0x256   : > { %v777_v41 = vsel %vm773_vm6, %v1081_v37, %v775_v38 }
 0x257   : > { %v779_v42 = vadd.f32 %v777_v41, %v1539_v24  ;;  %v776_v43 = vsel %vm772_vm7, %v761_v39, %v774_v40 }
 0x258   : > { %v778_v44 = vadd.f32 %v776_v43, %v1534_v8 }
 0x259   : > { %781 = vst.msk [vmem:[%s193_s25 + $0x8] sm:$0xff] %vm220_vm0, %v779_v42 }
 0x25a   : > { %780 = vst.msk [vmem:[%s193_s25] sm:$0xff] %vm220_vm0, %v778_v44 }
 0x25b   : > { %1320 = shalt.err (!%p1317_p11)
}
 0x25c   : > { %s1321_s9 = scalar_lea.hbm %s1563_s5, 256  ;;  %s1325_s10 = scalar_lea.hbm %s1614_s3, 512 }
 0x25d   : > { %p1322_p13 = scmp.ne.s32.totalorder %s1563_s5, %s1321_s9  ;;  %p1326_p6 = scmp.lt.u32.totalorder %s1563_s5, %s1614_s3 }
 0x25e   : > { %p1327_p9 = scmp.lt.u32.totalorder %s1325_s10, %s1321_s9  ;;  %p1329_p12 = scmp.lt.u32.totalorder %s1321_s9, %s1563_s5 }
 0x25f   : > { %p1323_p5 = pnand %p1322_p13, %p1627_p1 }
 0x260   : > { %p1328_p10 = por %p1327_p9, %p1326_p6 }
 0x261   : > { %p1324_p0 = pneg %p1323_p5 }
 0x262   : > { %p1330_p2 = por %p1329_p12, %p1328_p10 }
 0x264   : > { %p1331_p3 = pnand %p1330_p2, %p1324_p0 }
 0x266   : > { %1334 = shalt.err (!%p1331_p3)
}
 0x267   : > { %s1384_s17 = smov 128   ;;  %s1385_s19 = smov 8  }
 0x268   : > { %1195 = dma.vmem_to_hbm [thread:$0]  (%p1627_p1), %s1565_s28, 256, %s1563_s5, %s1570_s16, %s1384_s17, %s1384_s17, %s1385_s19  }
 0x269 PF: > { %p1212_p4 = scmp.ge.s32.totalorder %s1377_s15, 2  ;;  %s811_s20 = sand.u32 1, %s1365_s12  }
 0x26a   : > { %p1628_p7 = scmp.ne.s32.totalorder %s1619_s23, 0  ;;  %s812_s25 = scalar_lea.sflag [#allocation4], %s811_s20 }
 0x26c   : > { %p1205_p8 = pnand %p1212_p4, %p1628_p7 }
 0x26e   : > { %1360 = dma.done.wait (!%p1205_p8), %s812_s25, 256  }
 0x26f   : > { %1362 = vsyncadd (!%p1205_p8), %s812_s25, 4294967040  ;;  %p15_p11 = scmp.ge.s32.totalorder %s1431_s18, 4   ;;  %s1629_s12 = smov %s1369_s13 }
 0x270   : > { %s1630_s13 = smov %s1373_s14  ;;  %s1631_s14 = smov %s1442_s21 }
 0x271   : > { %s1632_s15 = smov %s1431_s18  ;;  %17 = sbr.rel (!%p15_p11) target bundleno = 5 (0x5), region = 80 }
 0x278   :  { %817 = vsyncpa [#allocation3], 1 }
 0x279   :  { %819 = vsyncpa [#allocation3 + $0x1], 1 }
 0x27a   :  { %820 = vsyncpa [#allocation6], 1 }
 0x27b   :  { %821 = vsyncpa [#allocation4], 1 }
 0x27c   :  { %823 = vsyncpa [#allocation4 + $0x1], 1 }

</bundles_post_ra>
